<compile_context>
chip_gen: v7x
topology: tpu7x:2x2x1
jax: 0.10.0
libtpu: 0.0.40
codegen_flags: <defaults>
</compile_context>

<pallas_src>
import functools

import jax
import jax.numpy as jnp
from jax.experimental import pallas as pl
from jax.experimental.pallas import tpu as pltpu


def _round_up(x, m):
    return ((x + m - 1) // m) * m


def _cdiv(a, b):
    return -(-a // b)


def _device_kind():
    try:
        return jax.devices()[0].device_kind.lower()
    except Exception:
        return ""


def _mlp_kernel(*refs, num_layers, mxu_dtype, tanh_dtype):
    """Fused MLP forward for one batch block.

    refs layout: x_ref, w0_ref, b0_ref, ..., w_{L-1}_ref, b_{L-1}_ref, o_ref
      x_ref : (Bblk, in0)          mxu_dtype  VMEM (blocked over batch)
      wi_ref: (in_i, out_i)        mxu_dtype  VMEM (whole array, pre-transposed W^T)
      bi_ref: (1, out_i)           f32        VMEM (whole array)
      o_ref : (Bblk, out_pad)      f32        VMEM (out_pad = round_up(out, 128))
    """
    x_ref = refs[0]
    o_ref = refs[1 + 2 * num_layers]

    h = x_ref[...]                               # bf16 activations block
    for i in range(num_layers):                  # static unroll (shapes static)
        w_ref = refs[1 + 2 * i]
        b_ref = refs[2 + 2 * i]
        if i > 0:
            h = jnp.tanh(h.astype(tanh_dtype))   # bf16 tanh on v6e/v7x, f32 on v5e
        h = jnp.dot(h.astype(mxu_dtype), w_ref[...],
                    preferred_element_type=jnp.float32) + b_ref[...]
    o_ref[...] = h.astype(o_ref.dtype)


def prep_params(params, mxu_dtype=jnp.bfloat16, lane=128):
    """One-time (hoisted) param prep: W (out,in) -> W^T (in,out) in mxu_dtype,
    b (out,) -> (1,out) f32.  The LAST layer's output dim is zero-padded to a
    multiple of 128 lanes so the kernel's output store is lane-dense."""
    out_features = params[-1][0].shape[0]
    layers = []
    for i, (w, b) in enumerate(params):
        w_t = jnp.asarray(w, jnp.float32).T.astype(mxu_dtype)   # (in, out)
        b2 = jnp.asarray(b, jnp.float32).reshape(1, -1)         # (1, out)
        if i == len(params) - 1:
            pad = _round_up(w_t.shape[1], lane) - w_t.shape[1]
            if pad:
                w_t = jnp.pad(w_t, ((0, 0), (0, pad)))
                b2 = jnp.pad(b2, ((0, 0), (0, pad)))
        layers.append((w_t, b2))
    return {"layers": layers, "out_features": out_features}


def nn_forward(x, prepped, *, block_b=1024):
    """Pallas equivalent of NN.forward, fully fused into one kernel.

    x: (B, in) float32; prepped: output of prep_params().
    """
    layers = prepped["layers"]
    out_f = prepped["out_features"]
    num_layers = len(layers)
    mxu_dtype = layers[0][0].dtype
    out_pad = layers[-1][0].shape[1]           # lane-padded final width

    B, in_f = x.shape
    kind = _device_kind()
    # v5e has no bf16 VPU/EUP path -> keep tanh in f32 there.
    tanh_dtype = jnp.float32 if "v5" in kind else jnp.bfloat16

    # Adaptive batch blocking: choose step count first, then the smallest block
    # (multiple of 16 for bf16 sublane packing) covering B -> minimal padded work.
    min_steps = 2 if ("v7" in kind and B >= 32) else 1   # feed both v7x TCs
    steps = max(_cdiv(B, block_b), min_steps)
    blk = _round_up(_cdiv(B, steps), 16)
    steps = _cdiv(B, blk)
    b_pad = blk * steps

    # Stage input as bf16 once (first matmul consumes bf16 operands anyway).
    x = x.astype(mxu_dtype)
    if b_pad != B:
        x = jnp.pad(x, ((0, b_pad - B), (0, 0)))

    # Whole-array, single-buffered VMEM residents for all weights/biases.
    vmem_full = pl.BlockSpec(memory_space=pltpu.MemorySpace.VMEM)
    flat_params = []
    in_specs = [pl.BlockSpec((blk, in_f), lambda i: (i, 0))]
    for w_t, b2 in layers:
        flat_params += [w_t, b2]
        in_specs += [vmem_full, vmem_full]

    # Explicit VMEM budget: params (single-buffered) + double-buffered x/out
    # blocks + headroom for intermediate activations.
    param_bytes = sum(w.size * w.dtype.itemsize + b.size * b.dtype.itemsize
                      for w, b in layers)
    widths = [in_f] + [w.shape[1] for w, _ in layers]
    io_bytes = 2 * blk * in_f * x.dtype.itemsize + 2 * blk * out_pad * 4
    act_bytes = 4 * blk * max(widths) * 4
    vmem_limit = int(min(max(param_bytes + io_bytes + act_bytes + (8 << 20),
                             16 << 20), 64 << 20))

    kernel = functools.partial(_mlp_kernel, num_layers=num_layers,
                               mxu_dtype=mxu_dtype, tanh_dtype=tanh_dtype)
    out = pl.pallas_call(
        kernel,
        out_shape=jax.ShapeDtypeStruct((b_pad, out_pad), jnp.float32),
        grid=(steps,),
        in_specs=in_specs,
        out_specs=pl.BlockSpec((blk, out_pad), lambda i: (i, 0)),
        compiler_params=pltpu.CompilerParams(
            dimension_semantics=("parallel",),     # shard batch across TCs (v7x)
            vmem_limit_bytes=vmem_limit),
    )(x, *flat_params)

    return out[:B, :out_f]


def init_params(key, in_size, out_size, layers):
    """Deterministic synthetic init matching NN.__init__ shapes (PyTorch layout)."""
    sizes = [in_size] + list(layers) + [out_size]
    params = []
    for i in range(len(sizes) - 1):
        fan_in, fan_out = sizes[i], sizes[i + 1]
        key, kw, kb = jax.random.split(key, 3)
        bound = 1.0 / jnp.sqrt(jnp.float32(fan_in))
        w = jax.random.uniform(kw, (fan_out, fan_in), jnp.float32, -bound, bound)
        b = jax.random.uniform(kb, (fan_out,), jnp.float32, -bound, bound)
        params.append((w, b))
    return params


def reference_forward(x, params, mxu_dtype=None, tanh_dtype=None):
    """Pure-JAX reference of the PyTorch forward.

    mxu_dtype / tanh_dtype mirror the kernel's operand casts (f32 accumulation);
    with both None it is the pure-f32 PyTorch math.
    """
    def lin(h, w, b):
        if mxu_dtype is not None:
            h = h.astype(mxu_dtype)
            w = w.astype(mxu_dtype)
        return jnp.dot(h, w.T, preferred_element_type=jnp.float32) + b

    w, b = params[0]
    y = lin(x, w, b)
    for w, b in params[1:]:
        t = y if tanh_dtype is None else y.astype(tanh_dtype)
        y = lin(jnp.tanh(t), w, b)
    return y


if __name__ == "__main__":
    key = jax.random.PRNGKey(0)
    key, kx, kx2 = jax.random.split(key, 3)

    batch = 8
    in_size, out_size = 32, 16
    hidden_layers = [64, 32]

    params = init_params(key, in_size, out_size, hidden_layers)
    prepped = prep_params(params, mxu_dtype=jnp.bfloat16)

    kind = _device_kind()
    tanh_dtype = jnp.float32 if "v5" in kind else jnp.bfloat16

    # Small forward (single grid step, lane-padded output path).
    x = jax.random.normal(kx, (batch, in_size), jnp.float32)
    out = jax.block_until_ready(nn_forward(x, prepped))
    assert out.shape == (batch, out_size)

    ref_mix = reference_forward(x, params, mxu_dtype=jnp.bfloat16,
                                tanh_dtype=tanh_dtype)
    ref_f32 = reference_forward(x, params)
    assert jnp.allclose(out, ref_mix, atol=1e-2, rtol=1e-2), \
        float(jnp.max(jnp.abs(out - ref_mix)))
    assert jnp.allclose(out, ref_f32, atol=8e-2, rtol=8e-2)

    # Larger batch exercising adaptive blocking, multi-step grid and slicing.
    big_batch = 300
    x2 = jax.random.normal(kx2, (big_batch, in_size), jnp.float32)
    out2 = jax.block_until_ready(nn_forward(x2, prepped, block_b=128))
    assert out2.shape == (big_batch, out_size)
    ref2 = reference_forward(x2, params, mxu_dtype=jnp.bfloat16,
                             tanh_dtype=tanh_dtype)
    assert jnp.allclose(out2, ref2, atol=1e-2, rtol=1e-2)

    print("KERNEL_OK")
</pallas_src>

<mosaic_0001>
module attributes {stable_mosaic.version = 11 : i64} {
  func.func @_mlp_kernel(%arg0: i32, %arg1: memref<16x32xbf16, #tpu.memory_space<vmem>>, %arg2: memref<32x64xbf16, #tpu.memory_space<vmem>>, %arg3: memref<1x64xf32, #tpu.memory_space<vmem>>, %arg4: memref<64x32xbf16, #tpu.memory_space<vmem>>, %arg5: memref<1x32xf32, #tpu.memory_space<vmem>>, %arg6: memref<32x128xbf16, #tpu.memory_space<vmem>>, %arg7: memref<1x128xf32, #tpu.memory_space<vmem>>, %arg8: memref<16x128xf32, #tpu.memory_space<vmem>>) attributes {dimension_semantics = [#tpu.dimension_semantics<parallel>], iteration_bounds = array<i64: 1>, scalar_prefetch = 0 : i64, scratch_operands = 0 : i64, tpu.core_type = #tpu.core_type<tc>, window_params = [{transform_indices = @transform_0, window_bounds = array<i64: 16, 32>}, {pipeline_mode = #tpu.pipeline_mode<synchronous>, transform_indices = @transform_1, window_bounds = array<i64: 32, 64>}, {pipeline_mode = #tpu.pipeline_mode<synchronous>, transform_indices = @transform_2, window_bounds = array<i64: 1, 64>}, {pipeline_mode = #tpu.pipeline_mode<synchronous>, transform_indices = @transform_3, window_bounds = array<i64: 64, 32>}, {pipeline_mode = #tpu.pipeline_mode<synchronous>, transform_indices = @transform_4, window_bounds = array<i64: 1, 32>}, {pipeline_mode = #tpu.pipeline_mode<synchronous>, transform_indices = @transform_5, window_bounds = array<i64: 32, 128>}, {pipeline_mode = #tpu.pipeline_mode<synchronous>, transform_indices = @transform_6, window_bounds = array<i64: 1, 128>}, {transform_indices = @transform_7, window_bounds = array<i64: 16, 128>}]} {
    %c0 = arith.constant 0 : index
    %c0_0 = arith.constant 0 : index
    %0 = vector.load %arg1[%c0, %c0_0] : memref<16x32xbf16, #tpu.memory_space<vmem>>, vector<16x32xbf16>
    %c0_1 = arith.constant 0 : index
    %c0_2 = arith.constant 0 : index
    %1 = vector.load %arg2[%c0_1, %c0_2] : memref<32x64xbf16, #tpu.memory_space<vmem>>, vector<32x64xbf16>
    %cst = arith.constant dense<0.000000e+00> : vector<16x64xf32>
    %2 = tpu.matmul %0, %1, %cst {dimension_numbers = #tpu.dot_dimension_numbers<[1], [0], [0], [1], [0, 0, 1, 1], [], []>} : vector<16x32xbf16>, vector<32x64xbf16>, vector<16x64xf32> -> vector<16x64xf32>
    %c0_3 = arith.constant 0 : index
    %c0_4 = arith.constant 0 : index
    %3 = vector.load %arg3[%c0_3, %c0_4] : memref<1x64xf32, #tpu.memory_space<vmem>>, vector<1x64xf32>
    %4 = vector.broadcast %3 : vector<1x64xf32> to vector<16x64xf32>
    %5 = arith.addf %2, %4 : vector<16x64xf32>
    %6 = arith.truncf %5 : vector<16x64xf32> to vector<16x64xbf16>
    %7 = math.tanh %6 : vector<16x64xbf16>
    %c0_5 = arith.constant 0 : index
    %c0_6 = arith.constant 0 : index
    %8 = vector.load %arg4[%c0_5, %c0_6] : memref<64x32xbf16, #tpu.memory_space<vmem>>, vector<64x32xbf16>
    %cst_7 = arith.constant dense<0.000000e+00> : vector<16x32xf32>
    %9 = tpu.matmul %7, %8, %cst_7 {dimension_numbers = #tpu.dot_dimension_numbers<[1], [0], [0], [1], [0, 0, 1, 1], [], []>} : vector<16x64xbf16>, vector<64x32xbf16>, vector<16x32xf32> -> vector<16x32xf32>
    %c0_8 = arith.constant 0 : index
    %c0_9 = arith.constant 0 : index
    %10 = vector.load %arg5[%c0_8, %c0_9] : memref<1x32xf32, #tpu.memory_space<vmem>>, vector<1x32xf32>
    %11 = vector.broadcast %10 : vector<1x32xf32> to vector<16x32xf32>
    %12 = arith.addf %9, %11 : vector<16x32xf32>
    %13 = arith.truncf %12 : vector<16x32xf32> to vector<16x32xbf16>
    %14 = math.tanh %13 : vector<16x32xbf16>
    %c0_10 = arith.constant 0 : index
    %c0_11 = arith.constant 0 : index
    %15 = vector.load %arg6[%c0_10, %c0_11] : memref<32x128xbf16, #tpu.memory_space<vmem>>, vector<32x128xbf16>
    %cst_12 = arith.constant dense<0.000000e+00> : vector<16x128xf32>
    %16 = tpu.matmul %14, %15, %cst_12 {dimension_numbers = #tpu.dot_dimension_numbers<[1], [0], [0], [1], [0, 0, 1, 1], [], []>} : vector<16x32xbf16>, vector<32x128xbf16>, vector<16x128xf32> -> vector<16x128xf32>
    %c0_13 = arith.constant 0 : index
    %c0_14 = arith.constant 0 : index
    %17 = vector.load %arg7[%c0_13, %c0_14] : memref<1x128xf32, #tpu.memory_space<vmem>>, vector<1x128xf32>
    %18 = vector.broadcast %17 : vector<1x128xf32> to vector<16x128xf32>
    %19 = arith.addf %16, %18 : vector<16x128xf32>
    %c0_15 = arith.constant 0 : index
    %c0_16 = arith.constant 0 : index
    %20 = vector.load %arg8[%c0_15, %c0_16] : memref<16x128xf32, #tpu.memory_space<vmem>>, vector<16x128xf32>
    tpu.vector_store %arg8[%c0_15, %c0_16], %19 {strides = array<i32>} : memref<16x128xf32, #tpu.memory_space<vmem>>, vector<16x128xf32>,
    return
  }
  func.func @transform_0(%arg0: i32) -> (i32, i32) {
    %c0_i32 = arith.constant 0 : i32
    %c0_i32_0 = arith.constant 0 : i32
    return %arg0, %c0_i32 : i32, i32
  }
  func.func @transform_1(%arg0: i32) -> (i32, i32) {
    %c0_i32 = arith.constant 0 : i32
    %c0_i32_0 = arith.constant 0 : i32
    %c0_i32_1 = arith.constant 0 : i32
    return %c0_i32, %c0_i32_0 : i32, i32
  }
  func.func @transform_2(%arg0: i32) -> (i32, i32) {
    %c0_i32 = arith.constant 0 : i32
    %c0_i32_0 = arith.constant 0 : i32
    %c0_i32_1 = arith.constant 0 : i32
    return %c0_i32, %c0_i32_0 : i32, i32
  }
  func.func @transform_3(%arg0: i32) -> (i32, i32) {
    %c0_i32 = arith.constant 0 : i32
    %c0_i32_0 = arith.constant 0 : i32
    %c0_i32_1 = arith.constant 0 : i32
    return %c0_i32, %c0_i32_0 : i32, i32
  }
  func.func @transform_4(%arg0: i32) -> (i32, i32) {
    %c0_i32 = arith.constant 0 : i32
    %c0_i32_0 = arith.constant 0 : i32
    %c0_i32_1 = arith.constant 0 : i32
    return %c0_i32, %c0_i32_0 : i32, i32
  }
  func.func @transform_5(%arg0: i32) -> (i32, i32) {
    %c0_i32 = arith.constant 0 : i32
    %c0_i32_0 = arith.constant 0 : i32
    %c0_i32_1 = arith.constant 0 : i32
    return %c0_i32, %c0_i32_0 : i32, i32
  }
  func.func @transform_6(%arg0: i32) -> (i32, i32) {
    %c0_i32 = arith.constant 0 : i32
    %c0_i32_0 = arith.constant 0 : i32
    %c0_i32_1 = arith.constant 0 : i32
    return %c0_i32, %c0_i32_0 : i32, i32
  }
  func.func @transform_7(%arg0: i32) -> (i32, i32) {
    %c0_i32 = arith.constant 0 : i32
    %c0_i32_0 = arith.constant 0 : i32
    return %arg0, %c0_i32 : i32, i32
  }
}

</mosaic_0001>

<bundles_post_ra>
// kernel: tpu_custom_call.1
= control target key start
LH: loop header
LB: loop body
LE: loop exit
PB: predicated region body
PF: predicated region fallthrough
CT: control target
= control target key end

     0   :  { %v372_v1 = vmov 0.0   ;;  %vm373_vm0 = vmmov 0   ;;  %vm58_vm1 = vcmask 261120   ;;  %s467_s0 = inlined_call_operand.vmem [shape: bf16[16,32], index: 0, kind: input, shape index: {}]   ;;  %s468_s1 = inlined_call_operand.vmem [shape: bf16[32,64], index: 1, kind: input, shape index: {}]   ;;  %s469_s2 = inlined_call_operand.vmem [shape: f32[1,64], index: 2, kind: input, shape index: {}]   ;;  %s470_s3 = inlined_call_operand.vmem [shape: bf16[64,32], index: 3, kind: input, shape index: {}]   ;;  %s471_s4 = inlined_call_operand.vmem [shape: f32[1,32], index: 4, kind: input, shape index: {}]   ;;  %s472_s5 = inlined_call_operand.vmem [shape: bf16[32,128], index: 5, kind: input, shape index: {}]   ;;  %s473_s6 = inlined_call_operand.vmem [shape: f32[1,128], index: 6, kind: input, shape index: {}]   ;;  %s474_s7 = inlined_call_operand.hbm [shape: f32[16,128], index: 7, kind: output, shape index: {}]  }
   0x1   :  { %v335_v0 = vld [vmem:[%s468_s1] sm:$0xff]   ;;  %302 = vmatprep.subr.bf16.mxu0 %v372_v1  ;;  %310 = vmatprep.subr.bf16.mxu1 %v372_v1  ;;  %v336_v2 = vld [vmem:[%s468_s1 + $0x8] sm:$0xff]  }
   0x2   :  { %303 = vmatpush3.bf16.msra.mxu0 %v335_v0  ;;  %306 = vmatprep.mubr.msk.bf16.mxu0 %vm373_vm0, %v372_v1  ;;  %v337_v3 = vld [vmem:[%s467_s0] sm:$0xff]  }
   0x3   :  { %304 = vmatprep.subr.bf16.mxu0 %v372_v1  ;;  %318 = vmatprep.mubr.msk.bf16.mxu1 %vm373_vm0, %v372_v1 }
   0x6   :  { %305 = vmatpush3.bf16.msra.mxu0 %v336_v2 }
   0x7   :  { %322 = vmatprep.subr.bf16.mxu0 %v372_v1 }
   0x8   :  { %12 = vsyncpa [#allocation3], 0  ;;  %v338_v4 = vld [vmem:[%s470_s3] sm:$0xff]   ;;  %v339_v5 = vld [vmem:[%s470_s3 + $0x8] sm:$0xff]   ;;  %vm144_vm2 = vcmask 523264  }
   0x9   :  { %307 = vmatmul.mubr.msk.bf16.vlgmr.msra.gmra.mrb[0].mxu0 %vm58_vm1, %v337_v3  ;;  %311 = vmatpush3.bf16.msra.mxu1 %v338_v4  ;;  %v340_v6 = vld [vmem:[%s470_s3 + $0x10] sm:$0xff]   ;;  %v341_v7 = vld [vmem:[%s470_s3 + $0x18] sm:$0xff]   ;;  %v276_v8 = vld [vmem:[%s469_s2] ss:$0 sm:$0xff] }
   0xa   :  { %326 = vmatprep.mubr.msk.bf16.mxu0 %vm373_vm0, %v372_v1  ;;  %312 = vmatprep.subr.bf16.mxu1 %v372_v1  ;;  %v342_v17 = vld [vmem:[%s472_s5] sm:$0xff]   ;;  %v343_v18 = vld [vmem:[%s472_s5 + $0x8] sm:$0xff]   ;;  %s374_s5 = smov [#allocation2]  }
   0xb   :  { %323 = vmatpush3.bf16.msra.mxu0 %v342_v17  ;;  %v281_v19 = vld [vmem:[%s471_s4] ss:$0 sm:$0xff]  ;;  %s265_s21 = sshll.u32 %s374_s5, 4  ;;  %s266_s21 = int_to_ptr.vmem [resolvable:$true] %s265_s21 }
   0xc   :  { %324 = vmatprep.subr.bf16.mxu0 %v372_v1  ;;  %v287_v28 = vld [vmem:[%s473_s6] ss:$0 sm:$0xff]  ;;  %s348_s4 = scalar_lea.vmem %s266_s21, 256  ;;  %p353_p1 = scmp.lt.s32.totalorder %s266_s21, %s266_s21 }
   0xd   :  { %313 = vmatpush3.bf16.msra.mxu1 %v339_v5  ;;  %p349_p0 = scmp.ne.s32.totalorder %s266_s21, %s348_s4  ;;  %p354_p2 = scmp.lt.s32.totalorder %s348_s4, %s348_s4 }
   0xe   :  { %314 = vmatprep.subr.bf16.mxu1 %v372_v1 }
   0xf   :  { %325 = vmatpush3.bf16.msra.mxu0 %v343_v18  ;;  %p355_p3 = por %p354_p2, %p353_p1 }
  0x11   :  { %315 = vmatpush3.bf16.msra.mxu1 %v340_v6  ;;  %p356_p4 = pnand %p355_p3, %p349_p0 }
  0x12   :  { %316 = vmatprep.subr.bf16.mxu1 %v372_v1 }
  0x15   :  { %317 = vmatpush3.bf16.msra.mxu1 %v341_v7 }
  0xdc   :  { %v96_v9 = vpop.f32.mrb[0].mxu0 }
  0xdd   :  { %v308_v10 = vpop.f32.mrb[1].mxu0  ;;  %v97_v12 = vadd.f32 %v276_v8, %v96_v9 }
  0xde   :  { %v99_v11 = vpop.f32.mrb[2].mxu0 }
  0xdf   :  { %v100_v13 = vadd.f32 %v276_v8, %v99_v11  ;;  %v309_v14 = vpop.f32.mrb[3].mxu0 }
  0xe1   :  { %v103_v15 = vpack.c.bf16 %v100_v13, %v97_v12 }
  0xe3   :  { %344 = vtanh.bf16 %v103_v15 }
  0xee   :  { %v345_v16 = vpop.eup %344 }
  0xef   :  { %319 = vmatmul.mubr.msk.bf16.vlgmr.msra.gmra.mrb[0].mxu1 %vm144_vm2, %v345_v16 }
 0x1c2   :  { %v182_v20 = vpop.f32.mrb[0].mxu1 }
 0x1c3   :  { %v320_v21 = vpop.f32.mrb[1].mxu1  ;;  %v183_v23 = vadd.f32 %v281_v19, %v182_v20 }
 0x1c4   :  { %v185_v22 = vpop.f32.mrb[2].mxu1 }
 0x1c5   :  { %v186_v24 = vadd.f32 %v281_v19, %v185_v22  ;;  %v321_v25 = vpop.f32.mrb[3].mxu1 }
 0x1c7   :  { %v189_v26 = vpack.c.bf16 %v186_v24, %v183_v23 }
 0x1c9   :  { %346 = vtanh.bf16 %v189_v26 }
 0x1d4   :  { %v347_v27 = vpop.eup %346 }
 0x1d5   :  { %327 = vmatmul.mubr.msk.bf16.vlgmr.msra.gmra.mrb[4].mxu0 %vm58_vm1, %v347_v27 }
 0x2a8   :  { %v251_v29 = vpop.f32.mrb[4].mxu0 }
 0x2a9   :  { %v252_v30 = vadd.f32 %v287_v28, %v251_v29  ;;  %v328_v31 = vpop.f32.mrb[5].mxu0 }
 0x2aa   :  { %v254_v32 = vpop.f32.mrb[6].mxu0 }
 0x2ab   :  { %258 = vst [vmem:[#allocation2] sm:$0xff] %v252_v30  ;;  %v255_v33 = vadd.f32 %v287_v28, %v254_v32  ;;  %v329_v34 = vpop.f32.mrb[7].mxu0 }
 0x2ad   :  { %259 = vst [vmem:[#allocation2 + $0x8] sm:$0xff] %v255_v33 }
 0x2ae   :  { %359 = shalt.err (!%p356_p4)
}
 0x2af   :  { %s360_s23 = scalar_lea.hbm %s474_s7, 256 }
 0x2b0   :  { %p361_p5 = scmp.ne.s32.totalorder %s474_s7, %s360_s23  ;;  %p364_p6 = scmp.lt.u32.totalorder %s360_s23, %s474_s7 }
 0x2b2   :  { %p366_p7 = pnand %p364_p6, %p361_p5 }
 0x2b4   :  { %369 = shalt.err (!%p366_p7)
}
 0x2b5   :  { %s375_s28 = smov 128   ;;  %s376_s29 = smov 8  }
 0x2b6   :  { %271 = dma.vmem_to_hbm [thread:$0]  %s266_s21, 256, %s474_s7, [#allocation3], %s375_s28, %s375_s28, %s376_s29  }
 0x2b7   :  { %370 = dma.done.wait [#allocation3], 256  }
 0x2b8   :  { %371 = vsyncadd [#allocation3], 4294967040 }
 0x2b9   :  { %275 = vsyncpa [#allocation3], 1 }

</bundles_post_ra>
